<compile_context>
chip_gen: v5e
topology: v5e:2x2
jax: 0.10.0
libtpu: 0.0.40
codegen_flags: <defaults>
</compile_context>

<pallas_src>
import functools
import math

import jax
import jax.numpy as jnp
from jax.experimental import pallas as pl
from jax.experimental.pallas import tpu as pltpu


# ----------------------------- Pallas kernel -------------------------------

def _lora_head_kernel(x_ref, w_ref, bias_ref, a_ref, b_ref, o_ref,
                      acc_ref, lora_ref, *, alpha):
    """Grid = (M/tm, N/tn, K/tk); K (contraction) innermost, j (out cols) middle.

    x_ref    : (tm, tk)  bf16 slice of x
    w_ref    : (tn, tk)  bf16 slice of W  (out, in)
    bias_ref : (1,  tn)  f32 bias slice
    a_ref    : (r,  tk)  bf16 slice of A  (r, in)
    b_ref    : (tn, r)   f32 slice of B  (out, r)
    o_ref    : (tm, tn)  output slice
    acc_ref  : (tm, tn)  f32 accumulator for x @ W^T   (reset at every (i, j))
    lora_ref : (tm, r)   f32 accumulator for x @ A^T   (built once per i, at j == 0)
    """
    j = pl.program_id(1)
    k = pl.program_id(2)
    nt = (((1,), (1,)), ((), ()))   # contract last dim of both operands (no .T)

    @pl.when(k == 0)
    def _():
        acc_ref[...] = jnp.zeros_like(acc_ref)

    @pl.when((j == 0) & (k == 0))
    def _():
        lora_ref[...] = jnp.zeros_like(lora_ref)

    x = x_ref[...]
    acc_ref[...] += jax.lax.dot_general(
        x, w_ref[...], nt, preferred_element_type=jnp.float32)

    # x @ A^T depends only on (i, k): compute it once per row-block (j == 0) and
    # reuse the persistent VMEM scratch for every subsequent j.
    @pl.when(j == 0)
    def _():
        lora_ref[...] += jax.lax.dot_general(
            x, a_ref[...], nt, preferred_element_type=jnp.float32)

    @pl.when(k == pl.num_programs(2) - 1)
    def _():
        upd = jax.lax.dot_general(
            lora_ref[...], b_ref[...], nt, preferred_element_type=jnp.float32)
        o_ref[...] = (acc_ref[...] + bias_ref[...] + alpha * upd).astype(o_ref.dtype)


def lora_head_matmul(x2d, weight, bias, A, B, alpha, *,
                     tm=256, tn=512, tk=512,
                     compute_dtype=jnp.bfloat16, out_dtype=None):
    """out = x2d @ W^T + bias + alpha * (x2d @ A^T) @ B^T, fused in Pallas."""
    M, K = x2d.shape
    N, K2 = weight.shape
    r = A.shape[0]
    assert K == K2 and A.shape[1] == K and B.shape == (N, r)
    out_dtype = out_dtype or x2d.dtype

    # Bounded tiles; fall back to the full extent only when smaller / indivisible.
    tm = min(tm, M)
    tn = min(tn, N)
    tk = min(tk, K)
    if M % tm:
        tm = M   # TODO(synk): ragged-tile padding not implemented
    if N % tn:
        tn = N
    if K % tk:
        tk = K
    grid = (M // tm, N // tn, K // tk)

    # bf16 streaming for the large operands (halves HBM bytes, single-pass MXU),
    # f32 accumulation inside the kernel via preferred_element_type.
    x_c = x2d.astype(compute_dtype)
    w_c = weight.astype(compute_dtype)
    a_c = A.astype(compute_dtype)
    b_c = B.astype(jnp.float32)
    bias_vec = jnp.zeros((N,), jnp.float32) if bias is None else bias
    bias2d = bias_vec.reshape(1, N).astype(jnp.float32)

    nbytes = lambda a: int(a.size) * a.dtype.itemsize
    cost = pl.CostEstimate(
        flops=2 * M * N * K + 2 * M * K * r + 2 * M * r * N,
        transcendentals=0,
        bytes_accessed=(nbytes(x_c) + nbytes(w_c) + nbytes(bias2d)
                        + nbytes(a_c) + nbytes(b_c)
                        + M * N * jnp.dtype(out_dtype).itemsize),
    )

    kernel = functools.partial(_lora_head_kernel, alpha=float(alpha))
    return pl.pallas_call(
        kernel,
        out_shape=jax.ShapeDtypeStruct((M, N), out_dtype),
        grid_spec=pltpu.PrefetchScalarGridSpec(
            num_scalar_prefetch=0,
            grid=grid,
            in_specs=[
                pl.BlockSpec((tm, tk), lambda i, j, k: (i, k)),   # x
                pl.BlockSpec((tn, tk), lambda i, j, k: (j, k)),   # W
                pl.BlockSpec((1, tn), lambda i, j, k: (0, j)),    # bias
                pl.BlockSpec((r, tk), lambda i, j, k: (0, k)),    # A
                pl.BlockSpec((tn, r), lambda i, j, k: (j, 0)),    # B
            ],
            out_specs=pl.BlockSpec((tm, tn), lambda i, j, k: (i, j)),
            scratch_shapes=[
                pltpu.VMEM((tm, tn), jnp.float32),   # x @ W^T accumulator
                pltpu.VMEM((tm, r), jnp.float32),    # x @ A^T accumulator (persists over j)
            ],
        ),
        compiler_params=pltpu.CompilerParams(
            # j carries lora_ref state across iterations -> must be "arbitrary";
            # megacore sharding happens on the i (rows) axis.
            dimension_semantics=("parallel", "arbitrary", "arbitrary"),
        ),
        cost_estimate=cost,
    )(x_c, w_c, bias2d, a_c, b_c)


# ------------------------- module parameters (glue) -------------------------

def init_params(key, in_features, out_features, encoder_emb_dim, r):
    """Deterministic parameter init mirroring the PyTorch module's __init__."""
    num_params = r * in_features + out_features * r
    ks = jax.random.split(key, 8)

    def xavier_uniform(k, shape):
        fan_out, fan_in = shape
        bound = math.sqrt(6.0 / (fan_in + fan_out))
        return jax.random.uniform(k, shape, jnp.float32, -bound, bound)

    # original (frozen) linear: PyTorch default kaiming_uniform ~ U(-1/sqrt(in), 1/sqrt(in))
    lim = 1.0 / math.sqrt(in_features)
    weight = jax.random.uniform(ks[0], (out_features, in_features), jnp.float32, -lim, lim)
    bias = jax.random.uniform(ks[1], (out_features,), jnp.float32, -lim, lim)

    # hyper_net: Linear(enc,64) -> ReLU -> Dropout -> Linear(64,32) -> ReLU -> Dropout -> Linear(32,num_params)
    W1 = xavier_uniform(ks[2], (64, encoder_emb_dim)); b1 = jnp.zeros((64,), jnp.float32)
    W2 = xavier_uniform(ks[3], (32, 64));              b2 = jnp.zeros((32,), jnp.float32)
    W3 = 0.001 * jax.random.normal(ks[4], (num_params, 32), jnp.float32)
    b3 = 0.001 * jax.random.normal(ks[5], (num_params,), jnp.float32)

    return dict(weight=weight, bias=bias, W1=W1, b1=b1, W2=W2, b2=b2, W3=W3, b3=b3)


def hyper_net_predict(params, token_embeddings):
    """The tiny hyper-network (eval mode; dropout = identity)."""
    mean_encoder = jnp.mean(token_embeddings, axis=0, keepdims=True)        # (1, enc)
    h = jnp.maximum(mean_encoder @ params["W1"].T + params["b1"], 0.0)      # (1, 64)
    h = jnp.maximum(h @ params["W2"].T + params["b2"], 0.0)                 # (1, 32)
    return (h @ params["W3"].T + params["b3"])[0]                           # (num_params,)


def lora_linear_hyper_forward(params, x, token_embeddings, *, r, alpha):
    """Forward pass matching LoRALinearHyper.forward (eval mode)."""
    in_features = params["weight"].shape[1]
    out_features = params["weight"].shape[0]

    pred = hyper_net_predict(params, token_embeddings)
    A = pred[: r * in_features].reshape(r, in_features)                     # (r, in)
    B = pred[r * in_features:].reshape(out_features, r)                     # (out, r)

    # hot path: fused LM-head + LoRA update in Pallas.
    lead_shape = x.shape[:-1]
    x2d = x.reshape(-1, in_features)
    out2d = lora_head_matmul(x2d, params["weight"], params["bias"], A, B, alpha,
                             out_dtype=x.dtype)
    return out2d.reshape(*lead_shape, out_features)


# --------------------------------- demo ------------------------------------

if __name__ == "__main__":
    # small shapes consistent with the module
    batch, seq = 2, 8
    in_features = 256        # hidden size feeding the LM head
    out_features = 512       # "vocab" size (LM head out)
    encoder_emb_dim = 32
    enc_seq = 8
    r, alpha = 4, 1.0

    key = jax.random.PRNGKey(0)
    k_params, k_x, k_emb = jax.random.split(key, 3)

    params = init_params(k_params, in_features, out_features, encoder_emb_dim, r)
    x = jax.random.normal(k_x, (batch, seq, in_features), jnp.float32)
    token_embeddings = jax.random.normal(k_emb, (enc_seq, encoder_emb_dim), jnp.float32)

    out = lora_linear_hyper_forward(params, x, token_embeddings, r=r, alpha=alpha)
    out = jax.block_until_ready(out)
    assert out.shape == (batch, seq, out_features)

    # pure-JAX reference check (same bf16 rounding of the streamed operands as the kernel)
    pred = hyper_net_predict(params, token_embeddings)
    A = pred[: r * in_features].reshape(r, in_features)
    B = pred[r * in_features:].reshape(out_features, r)
    x16 = x.astype(jnp.bfloat16).astype(jnp.float32)
    w16 = params["weight"].astype(jnp.bfloat16).astype(jnp.float32)
    A16 = A.astype(jnp.bfloat16).astype(jnp.float32)
    ref = x16 @ w16.T + params["bias"] + alpha * ((x16 @ A16.T) @ B.T)
    assert jnp.allclose(out, ref, atol=5e-3, rtol=5e-3), "mismatch vs reference"

    print("KERNEL_OK")
</pallas_src>

<mosaic_0001>
module attributes {stable_mosaic.version = 11 : i64} {
  func.func @_lora_head_kernel(%arg0: i32, %arg1: i32, %arg2: i32, %arg3: memref<16x256xbf16, #tpu.memory_space<vmem>>, %arg4: memref<512x256xbf16, #tpu.memory_space<vmem>>, %arg5: memref<1x512xf32, #tpu.memory_space<vmem>>, %arg6: memref<4x256xbf16, #tpu.memory_space<vmem>>, %arg7: memref<512x4xf32, #tpu.memory_space<vmem>>, %arg8: memref<16x512xf32, #tpu.memory_space<vmem>>, %arg9: memref<16x512xf32, #tpu.memory_space<vmem>>, %arg10: memref<16x4xf32, #tpu.memory_space<vmem>>) attributes {dimension_semantics = [#tpu.dimension_semantics<parallel>, #tpu.dimension_semantics<arbitrary>, #tpu.dimension_semantics<arbitrary>], iteration_bounds = array<i64: 1, 1, 1>, scalar_prefetch = 0 : i64, scratch_operands = 2 : i64, tpu.core_type = #tpu.core_type<tc>, window_params = [{transform_indices = @transform_0, window_bounds = array<i64: 16, 256>}, {transform_indices = @transform_1, window_bounds = array<i64: 512, 256>}, {transform_indices = @transform_2, window_bounds = array<i64: 1, 512>}, {transform_indices = @transform_3, window_bounds = array<i64: 4, 256>}, {transform_indices = @transform_4, window_bounds = array<i64: 512, 4>}, {transform_indices = @transform_5, window_bounds = array<i64: 16, 512>}]} {
    %c0_i32 = arith.constant 0 : i32
    %0 = arith.cmpi eq, %arg2, %c0_i32 : i32
    %1 = arith.extui %0 : i1 to i32
    %c0_i32_0 = arith.constant 0 : i32
    %2 = arith.cmpi ne, %1, %c0_i32_0 : i32
    scf.if %2 {
      %cst_15 = arith.constant 0.000000e+00 : f32
      %20 = vector.broadcast %cst_15 : f32 to vector<16x512xf32>
      %c0_16 = arith.constant 0 : index
      %c0_17 = arith.constant 0 : index
      %21 = vector.load %arg9[%c0_16, %c0_17] : memref<16x512xf32, #tpu.memory_space<vmem>>, vector<16x512xf32>
      tpu.vector_store %arg9[%c0_16, %c0_17], %20 {strides = array<i32>} : memref<16x512xf32, #tpu.memory_space<vmem>>, vector<16x512xf32>,
    } else {
    }
    %c0_i32_1 = arith.constant 0 : i32
    %3 = arith.cmpi eq, %arg1, %c0_i32_1 : i32
    %c0_i32_2 = arith.constant 0 : i32
    %4 = arith.cmpi eq, %arg2, %c0_i32_2 : i32
    %5 = arith.andi %3, %4 : i1
    %6 = arith.extui %5 : i1 to i32
    %c0_i32_3 = arith.constant 0 : i32
    %7 = arith.cmpi ne, %6, %c0_i32_3 : i32
    scf.if %7 {
      %cst_15 = arith.constant 0.000000e+00 : f32
      %20 = vector.broadcast %cst_15 : f32 to vector<16x4xf32>
      %c0_16 = arith.constant 0 : index
      %c0_17 = arith.constant 0 : index
      %21 = vector.load %arg10[%c0_16, %c0_17] : memref<16x4xf32, #tpu.memory_space<vmem>>, vector<16x4xf32>
      tpu.vector_store %arg10[%c0_16, %c0_17], %20 {strides = array<i32>} : memref<16x4xf32, #tpu.memory_space<vmem>>, vector<16x4xf32>,
    } else {
    }
    %c0 = arith.constant 0 : index
    %c0_4 = arith.constant 0 : index
    %8 = vector.load %arg3[%c0, %c0_4] : memref<16x256xbf16, #tpu.memory_space<vmem>>, vector<16x256xbf16>
    %c0_5 = arith.constant 0 : index
    %c0_6 = arith.constant 0 : index
    %9 = vector.load %arg9[%c0_5, %c0_6] : memref<16x512xf32, #tpu.memory_space<vmem>>, vector<16x512xf32>
    %c0_7 = arith.constant 0 : index
    %c0_8 = arith.constant 0 : index
    %10 = vector.load %arg4[%c0_7, %c0_8] : memref<512x256xbf16, #tpu.memory_space<vmem>>, vector<512x256xbf16>
    %cst = arith.constant dense<0.000000e+00> : vector<16x512xf32>
    %11 = tpu.matmul %8, %10, %cst {dimension_numbers = #tpu.dot_dimension_numbers<[1], [1], [0], [0], [0, 0, 1, 0], [], []>} : vector<16x256xbf16>, vector<512x256xbf16>, vector<16x512xf32> -> vector<16x512xf32>
    %12 = arith.addf %9, %11 : vector<16x512xf32>
    %c0_9 = arith.constant 0 : index
    %c0_10 = arith.constant 0 : index
    %13 = vector.load %arg9[%c0_9, %c0_10] : memref<16x512xf32, #tpu.memory_space<vmem>>, vector<16x512xf32>
    tpu.vector_store %arg9[%c0_9, %c0_10], %12 {strides = array<i32>} : memref<16x512xf32, #tpu.memory_space<vmem>>, vector<16x512xf32>,
    %c0_i32_11 = arith.constant 0 : i32
    %14 = arith.cmpi eq, %arg1, %c0_i32_11 : i32
    %15 = arith.extui %14 : i1 to i32
    %c0_i32_12 = arith.constant 0 : i32
    %16 = arith.cmpi ne, %15, %c0_i32_12 : i32
    scf.if %16 {
      %c0_15 = arith.constant 0 : index
      %c0_16 = arith.constant 0 : index
      %20 = vector.load %arg10[%c0_15, %c0_16] : memref<16x4xf32, #tpu.memory_space<vmem>>, vector<16x4xf32>
      %c0_17 = arith.constant 0 : index
      %c0_18 = arith.constant 0 : index
      %21 = vector.load %arg6[%c0_17, %c0_18] : memref<4x256xbf16, #tpu.memory_space<vmem>>, vector<4x256xbf16>
      %cst_19 = arith.constant dense<0.000000e+00> : vector<16x4xf32>
      %22 = tpu.matmul %8, %21, %cst_19 {dimension_numbers = #tpu.dot_dimension_numbers<[1], [1], [0], [0], [0, 0, 1, 0], [], []>} : vector<16x256xbf16>, vector<4x256xbf16>, vector<16x4xf32> -> vector<16x4xf32>
      %23 = arith.addf %20, %22 : vector<16x4xf32>
      %c0_20 = arith.constant 0 : index
      %c0_21 = arith.constant 0 : index
      %24 = vector.load %arg10[%c0_20, %c0_21] : memref<16x4xf32, #tpu.memory_space<vmem>>, vector<16x4xf32>
      tpu.vector_store %arg10[%c0_20, %c0_21], %23 {strides = array<i32>} : memref<16x4xf32, #tpu.memory_space<vmem>>, vector<16x4xf32>,
    } else {
    }
    %c0_i32_13 = arith.constant 0 : i32
    %17 = arith.cmpi eq, %arg2, %c0_i32_13 : i32
    %18 = arith.extui %17 : i1 to i32
    %c0_i32_14 = arith.constant 0 : i32
    %19 = arith.cmpi ne, %18, %c0_i32_14 : i32
    scf.if %19 {
      %c0_15 = arith.constant 0 : index
      %c0_16 = arith.constant 0 : index
      %20 = vector.load %arg10[%c0_15, %c0_16] : memref<16x4xf32, #tpu.memory_space<vmem>>, vector<16x4xf32>
      %c0_17 = arith.constant 0 : index
      %c0_18 = arith.constant 0 : index
      %21 = vector.load %arg7[%c0_17, %c0_18] : memref<512x4xf32, #tpu.memory_space<vmem>>, vector<512x4xf32>
      %cst_19 = arith.constant dense<0.000000e+00> : vector<16x512xf32>
      %22 = tpu.matmul %20, %21, %cst_19 {dimension_numbers = #tpu.dot_dimension_numbers<[1], [1], [0], [0], [0, 0, 1, 0], [], []>} : vector<16x4xf32>, vector<512x4xf32>, vector<16x512xf32> -> vector<16x512xf32>
      %c0_20 = arith.constant 0 : index
      %c0_21 = arith.constant 0 : index
      %23 = vector.load %arg9[%c0_20, %c0_21] : memref<16x512xf32, #tpu.memory_space<vmem>>, vector<16x512xf32>
      %c0_22 = arith.constant 0 : index
      %c0_23 = arith.constant 0 : index
      %24 = vector.load %arg5[%c0_22, %c0_23] : memref<1x512xf32, #tpu.memory_space<vmem>>, vector<1x512xf32>
      %25 = vector.broadcast %24 : vector<1x512xf32> to vector<16x512xf32>
      %26 = arith.addf %23, %25 : vector<16x512xf32>
      %cst_24 = arith.constant 1.000000e+00 : f32
      %27 = vector.broadcast %cst_24 : f32 to vector<16x512xf32>
      %28 = arith.mulf %27, %22 : vector<16x512xf32>
      %29 = arith.addf %26, %28 : vector<16x512xf32>
      %c0_25 = arith.constant 0 : index
      %c0_26 = arith.constant 0 : index
      %30 = vector.load %arg8[%c0_25, %c0_26] : memref<16x512xf32, #tpu.memory_space<vmem>>, vector<16x512xf32>
      tpu.vector_store %arg8[%c0_25, %c0_26], %29 {strides = array<i32>} : memref<16x512xf32, #tpu.memory_space<vmem>>, vector<16x512xf32>,
    } else {
    }
    return
  }
  func.func @transform_0(%arg0: i32, %arg1: i32, %arg2: i32) -> (i32, i32) {
    %c0_i32 = arith.constant 0 : i32
    return %arg0, %arg2 : i32, i32
  }
  func.func @transform_1(%arg0: i32, %arg1: i32, %arg2: i32) -> (i32, i32) {
    %c0_i32 = arith.constant 0 : i32
    return %arg1, %arg2 : i32, i32
  }
  func.func @transform_2(%arg0: i32, %arg1: i32, %arg2: i32) -> (i32, i32) {
    %c0_i32 = arith.constant 0 : i32
    %c0_i32_0 = arith.constant 0 : i32
    return %c0_i32, %arg1 : i32, i32
  }
  func.func @transform_3(%arg0: i32, %arg1: i32, %arg2: i32) -> (i32, i32) {
    %c0_i32 = arith.constant 0 : i32
    %c0_i32_0 = arith.constant 0 : i32
    return %c0_i32, %arg2 : i32, i32
  }
  func.func @transform_4(%arg0: i32, %arg1: i32, %arg2: i32) -> (i32, i32) {
    %c0_i32 = arith.constant 0 : i32
    %c0_i32_0 = arith.constant 0 : i32
    return %arg1, %c0_i32 : i32, i32
  }
  func.func @transform_5(%arg0: i32, %arg1: i32, %arg2: i32) -> (i32, i32) {
    %c0_i32 = arith.constant 0 : i32
    return %arg0, %arg1 : i32, i32
  }
}

</mosaic_0001>

<bundles_post_ra>
// kernel: tpu_custom_call.1
= control target key start
LH: loop header
LB: loop body
LE: loop exit
PB: predicated region body
PF: predicated region fallthrough
CT: control target
= control target key end

     0   :  { %10 = vsyncpa [#allocation5], 0  ;;  %s2284_s0 = inlined_call_operand.vmem [shape: bf16[16,256], index: 0, kind: input, shape index: {}]   ;;  %s2285_s1 = inlined_call_operand.vmem [shape: bf16[512,256], index: 1, kind: input, shape index: {}]   ;;  %s2286_s2 = inlined_call_operand.hbm [shape: f32[1,512], index: 2, kind: input, shape index: {}]   ;;  %s2287_s3 = inlined_call_operand.hbm [shape: bf16[4,256], index: 3, kind: input, shape index: {}]   ;;  %s2288_s4 = inlined_call_operand.vmem [shape: f32[512,4], index: 4, kind: input, shape index: {}]   ;;  %s2289_s5 = inlined_call_operand.hbm [shape: f32[16,512], index: 5, kind: output, shape index: {}]  }
   0x1   :  { %11 = vsyncpa [#allocation8], 0 }
   0x2   :  { %12 = vsyncpa [#allocation6], 0  ;;  %s22_s20 = sshll.u32 %s2286_s2, 4  ;;  %s1555_s21 = smov [#allocation4]   ;;  %s23_s20 = int_to_ptr.hbm [resolvable:$true] %s22_s20 }
   0x3   :  { %s24_s22 = sshll.u32 %s1555_s21, 4  ;;  %s33_s25 = sshll.u32 %s2287_s3, 4  ;;  %s25_s22 = int_to_ptr.vmem [resolvable:$true] %s24_s22  ;;  %s34_s25 = int_to_ptr.hbm [resolvable:$true] %s33_s25 }
   0x4   :  { %27 = dma.hbm_to_vmem [thread:$0]  %s23_s20, 64, %s25_s22, [#allocation5]  }
   0x5   :  { %s1556_s26 = smov [#allocation7]  }
   0x6   :  { %s35_s27 = sshll.u32 %s1556_s26, 4  ;;  %s36_s27 = int_to_ptr.vmem [resolvable:$true] %s35_s27 }
   0x7   :  { %38 = dma.hbm_to_vmem [thread:$0]  %s34_s25, 64, %s36_s27, [#allocation8]  }
   0x8   :  { %1549 = dma.done.wait [#allocation5], 64  }
   0x9   :  { %1550 = vsyncadd [#allocation5], 4294967232 }
   0xa   :  { %1551 = dma.done.wait [#allocation8], 64  }
   0xb   :  { %1552 = vsyncadd [#allocation8], 4294967232  ;;  %v1135_v0 = vld [vmem:[%s2285_s1 + $0x70] sm:$0xf]  ;;  %v1422_v1 = vld [vmem:[%s2285_s1 + $0x74] sm:$0xf0] }
   0xc   :  { %v1421_v2 = vld [vmem:[%s2285_s1 + $0x74] sm:$0xf]  ;;  %v1136_v3 = vor.u32 %v1422_v1, %v1135_v0  ;;  %v1137_v4 = vld [vmem:[%s2285_s1 + $0x78] sm:$0xf0]  ;;  %v1127_v6 = vld [vmem:[%s2285_s1 + $0x60] sm:$0xf] }
   0xd   :  { %v1140_v5 = vor.u32 %v1421_v2, %v1137_v4  ;;  %v1420_v7 = vld [vmem:[%s2285_s1 + $0x64] sm:$0xf0]  ;;  %v1419_v8 = vld [vmem:[%s2285_s1 + $0x64] sm:$0xf]  ;;  %v1129_v9 = vld [vmem:[%s2285_s1 + $0x68] sm:$0xf0] }
   0xe   :  { %474 = vmatpush.bf16.xpose.msra.mxu0 %v1136_v3  ;;  %v1128_v10 = vor.u32 %v1420_v7, %v1127_v6  ;;  %v1132_v11 = vor.u32 %v1419_v8, %v1129_v9  ;;  %v1119_v12 = vld [vmem:[%s2285_s1 + $0x50] sm:$0xf]  ;;  %v1418_v13 = vld [vmem:[%s2285_s1 + $0x54] sm:$0xf0]  ;;  %v1417_v14 = vld [vmem:[%s2285_s1 + $0x54] sm:$0xf] }
   0xf   :  { %488 = vmatpush.bf16.xpose.msra.mxu1 %v1140_v5  ;;  %v1121_v15 = vld [vmem:[%s2285_s1 + $0x58] sm:$0xf0]  ;;  %v1120_v16 = vor.u32 %v1418_v13, %v1119_v12  ;;  %v1111_v18 = vld [vmem:[%s2285_s1 + $0x40] sm:$0xf]  ;;  %v1416_v19 = vld [vmem:[%s2285_s1 + $0x44] sm:$0xf0] }
  0x10   :  { %v1124_v17 = vor.u32 %v1417_v14, %v1121_v15  ;;  %v1415_v20 = vld [vmem:[%s2285_s1 + $0x44] sm:$0xf]  ;;  %v1113_v21 = vld [vmem:[%s2285_s1 + $0x48] sm:$0xf0]  ;;  %v1112_v22 = vor.u32 %v1416_v19, %v1111_v18  ;;  %v1103_v24 = vld [vmem:[%s2285_s1 + $0x30] sm:$0xf] }
  0x11   :  { %v1116_v23 = vor.u32 %v1415_v20, %v1113_v21  ;;  %v1414_v25 = vld [vmem:[%s2285_s1 + $0x34] sm:$0xf0]  ;;  %v1413_v26 = vld [vmem:[%s2285_s1 + $0x34] sm:$0xf]  ;;  %v1105_v27 = vld [vmem:[%s2285_s1 + $0x38] sm:$0xf0] }
  0x12   :  { %v1104_v28 = vor.u32 %v1414_v25, %v1103_v24  ;;  %v1108_v29 = vor.u32 %v1413_v26, %v1105_v27  ;;  %v1095_v30 = vld [vmem:[%s2285_s1 + $0x20] sm:$0xf]  ;;  %v1412_v31 = vld [vmem:[%s2285_s1 + $0x24] sm:$0xf0]  ;;  %v1411_v32 = vld [vmem:[%s2285_s1 + $0x24] sm:$0xf] }
  0x13   :  { %v1097_v33 = vld [vmem:[%s2285_s1 + $0x28] sm:$0xf0]  ;;  %v1096_v34 = vor.u32 %v1412_v31, %v1095_v30  ;;  %v1087_v36 = vld [vmem:[%s2285_s1 + $0x10] sm:$0xf]  ;;  %v1410_v37 = vld [vmem:[%s2285_s1 + $0x14] sm:$0xf0] }
  0x14   :  { %v1100_v35 = vor.u32 %v1411_v32, %v1097_v33  ;;  %v1409_v38 = vld [vmem:[%s2285_s1 + $0x14] sm:$0xf]  ;;  %v1089_v39 = vld [vmem:[%s2285_s1 + $0x18] sm:$0xf0]  ;;  %v1088_v40 = vor.u32 %v1410_v37, %v1087_v36  ;;  %v1079_v42 = vld [vmem:[%s2285_s1] sm:$0xf] }
  0x15   :  { %v1092_v41 = vor.u32 %v1409_v38, %v1089_v39  ;;  %v1408_v43 = vld [vmem:[%s2285_s1 + $0x4] sm:$0xf0]  ;;  %v1407_v44 = vld [vmem:[%s2285_s1 + $0x4] sm:$0xf]  ;;  %v1081_v45 = vld [vmem:[%s2285_s1 + $0x8] sm:$0xf0] }
  0x16   :  { %475 = vmatpush.bf16.xpose.msra.mxu0 %v1128_v10  ;;  %v1263_v46 = vld [vmem:[%s2285_s1 + $0x170] sm:$0xf]  ;;  %v1454_v47 = vld [vmem:[%s2285_s1 + $0x174] sm:$0xf0]  ;;  %v1453_v48 = vld [vmem:[%s2285_s1 + $0x174] sm:$0xf]  ;;  %v1080_v50 = vor.u32 %v1408_v43, %v1079_v42  ;;  %v1084_v51 = vor.u32 %v1407_v44, %v1081_v45 }
  0x17   :  { %489 = vmatpush.bf16.xpose.msra.mxu1 %v1132_v11  ;;  %v1265_v49 = vld [vmem:[%s2285_s1 + $0x178] sm:$0xf0]  ;;  %v1264_v52 = vor.u32 %v1454_v47, %v1263_v46  ;;  %v1255_v54 = vld [vmem:[%s2285_s1 + $0x160] sm:$0xf]  ;;  %v1452_v55 = vld [vmem:[%s2285_s1 + $0x164] sm:$0xf0] }
  0x18   :  { %v1268_v53 = vor.u32 %v1453_v48, %v1265_v49  ;;  %v1451_v56 = vld [vmem:[%s2285_s1 + $0x164] sm:$0xf]  ;;  %v1257_v57 = vld [vmem:[%s2285_s1 + $0x168] sm:$0xf0]  ;;  %v1071_v58 = vld [vmem:[%s2284_s0] sm:$0xf]  ;;  %v1256_v5 = vor.u32 %v1452_v55, %v1255_v54 }
  0x19   :  { %v1406_v59 = vld [vmem:[%s2284_s0 + $0x4] sm:$0xf0]  ;;  %v1405_v60 = vld [vmem:[%s2284_s0 + $0x4] sm:$0xf]  ;;  %v1073_v62 = vld [vmem:[%s2284_s0 + $0x8] sm:$0xf0]  ;;  %v1260_v7 = vor.u32 %v1451_v56, %v1257_v57 }
  0x1a   :  { %v1726_v61 = vor.u32 %v1406_v59, %v1071_v58  ;;  %v1199_v63 = vld [vmem:[%s2285_s1 + $0xf0] sm:$0xf]  ;;  %v1438_v0 = vld [vmem:[%s2285_s1 + $0xf4] sm:$0xf0]  ;;  %v1737_v1 = vor.u32 %v1405_v60, %v1073_v62  ;;  %v1437_v3 = vld [vmem:[%s2285_s1 + $0xf4] sm:$0xf] }
  0x1b   :  { %v1200_v2 = vor.u32 %v1438_v0, %v1199_v63  ;;  %v1201_v4 = vld [vmem:[%s2285_s1 + $0xf8] sm:$0xf0]  ;;  %v1247_v8 = vld [vmem:[%s2285_s1 + $0x150] sm:$0xf]  ;;  %v1450_v9 = vld [vmem:[%s2285_s1 + $0x154] sm:$0xf0] }
  0x1c   :  { %v1204_v6 = vor.u32 %v1437_v3, %v1201_v4  ;;  %v1191_v10 = vld [vmem:[%s2285_s1 + $0xe0] sm:$0xf]  ;;  %v1436_v11 = vld [vmem:[%s2285_s1 + $0xe4] sm:$0xf0]  ;;  %v1435_v12 = vld [vmem:[%s2285_s1 + $0xe4] sm:$0xf]  ;;  %v1248_v18 = vor.u32 %v1450_v9, %v1247_v8 }
  0x1d   :  { %502 = vmatpush.bf16.xpose.msra.mxu2 %v1200_v2  ;;  %v1449_v13 = vld [vmem:[%s2285_s1 + $0x154] sm:$0xf]  ;;  %v1249_v14 = vld [vmem:[%s2285_s1 + $0x158] sm:$0xf0]  ;;  %v1192_v15 = vor.u32 %v1436_v11, %v1191_v10  ;;  %v1239_v20 = vld [vmem:[%s2285_s1 + $0x140] sm:$0xf] }
  0x1e   :  { %476 = vmatpush.bf16.xpose.msra.mxu0 %v1120_v16  ;;  %516 = vmatpush.bf16.xpose.msra.mxu3 %v1204_v6  ;;  %v1193_v16 = vld [vmem:[%s2285_s1 + $0xe8] sm:$0xf0]  ;;  %v1252_v19 = vor.u32 %v1449_v13, %v1249_v14  ;;  %v1448_v21 = vld [vmem:[%s2285_s1 + $0x144] sm:$0xf0]  ;;  %v1433_v24 = vld [vmem:[%s2285_s1 + $0xd4] sm:$0xf] }
  0x1f   :  { %490 = vmatpush.bf16.xpose.msra.mxu1 %v1124_v17  ;;  %v1196_v17 = vor.u32 %v1435_v12, %v1193_v16  ;;  %v1447_v25 = vld [vmem:[%s2285_s1 + $0x144] sm:$0xf]  ;;  %v1241_v26 = vld [vmem:[%s2285_s1 + $0x148] sm:$0xf0]  ;;  %v1240_v30 = vor.u32 %v1448_v21, %v1239_v20  ;;  %v1231_v32 = vld [vmem:[%s2285_s1 + $0x130] sm:$0xf] }
  0x20   :  { %v1244_v31 = vor.u32 %v1447_v25, %v1241_v26  ;;  %v1446_v33 = vld [vmem:[%s2285_s1 + $0x134] sm:$0xf0]  ;;  %v1175_v38 = vld [vmem:[%s2285_s1 + $0xc0] sm:$0xf]  ;;  %v1432_v39 = vld [vmem:[%s2285_s1 + $0xc4] sm:$0xf0] }
  0x21   :  { %v1232_v36 = vor.u32 %v1446_v33, %v1231_v32  ;;  %v1177_v42 = vld [vmem:[%s2285_s1 + $0xc8] sm:$0xf0]  ;;  %v1223_v43 = vld [vmem:[%s2285_s1 + $0x120] sm:$0xf]  ;;  %v607_v44 = vld [vmem:[#allocation7] sm:$0xf] }
  0x22   :  { %v1444_v46 = vld [vmem:[%s2285_s1 + $0x124] sm:$0xf0]  ;;  %v1443_v47 = vld [vmem:[%s2285_s1 + $0x124] sm:$0xf]  ;;  %609 = vst [vmem:[#allocation1] ss:$4 sm:$0xff] %v607_v44 }
  0x23   :  { %v1225_v48 = vld [vmem:[%s2285_s1 + $0x128] sm:$0xf0]  ;;  %v1167_v49 = vld [vmem:[%s2285_s1 + $0xb0] sm:$0xf]  ;;  %v1442_v58 = vld [vmem:[%s2285_s1 + $0x114] sm:$0xf0] }
  0x24   :  { %v1228_v54 = vor.u32 %v1443_v47, %v1225_v48  ;;  %v1215_v57 = vld [vmem:[%s2285_s1 + $0x110] sm:$0xf]  ;;  %v1441_v59 = vld [vmem:[%s2285_s1 + $0x114] sm:$0xf]  ;;  %v1217_v60 = vld [vmem:[%s2285_s1 + $0x118] sm:$0xf0] }
  0x25   :  { %503 = vmatpush.bf16.xpose.msra.mxu2 %v1192_v15  ;;  %v1216_v62 = vor.u32 %v1442_v58, %v1215_v57  ;;  %v1220_v63 = vor.u32 %v1441_v59, %v1217_v60  ;;  %v1159_v0 = vld [vmem:[%s2285_s1 + $0xa0] sm:$0xf]  ;;  %v1428_v2 = vld [vmem:[%s2285_s1 + $0xa4] sm:$0xf0]  ;;  %v1427_v3 = vld [vmem:[%s2285_s1 + $0xa4] sm:$0xf] }
  0x26   :  { %477 = vmatpush.bf16.xpose.msra.mxu0 %v1112_v22  ;;  %517 = vmatpush.bf16.xpose.msra.mxu3 %v1196_v17  ;;  %v1183_v22 = vld [vmem:[%s2285_s1 + $0xd0] sm:$0xf]  ;;  %v1160_v4 = vor.u32 %v1428_v2, %v1159_v0  ;;  %v1440_v8 = vld [vmem:[%s2285_s1 + $0x104] sm:$0xf0]  ;;  %v1439_v9 = vld [vmem:[%s2285_s1 + $0x104] sm:$0xf] }
  0x27   :  { %491 = vmatpush.bf16.xpose.msra.mxu1 %v1116_v23  ;;  %v1434_v23 = vld [vmem:[%s2285_s1 + $0xd4] sm:$0xf0]  ;;  %v1209_v10 = vld [vmem:[%s2285_s1 + $0x108] sm:$0xf0]  ;;  %v1151_v11 = vld [vmem:[%s2285_s1 + $0x90] sm:$0xf] }
  0x28   :  { %v1184_v27 = vor.u32 %v1434_v23, %v1183_v22  ;;  %v1426_v12 = vld [vmem:[%s2285_s1 + $0x94] sm:$0xf0]  ;;  %v1425_v14 = vld [vmem:[%s2285_s1 + $0x94] sm:$0xf]  ;;  %v1153_v15 = vld [vmem:[%s2285_s1 + $0x98] sm:$0xf0]  ;;  %v1212_v16 = vor.u32 %v1439_v9, %v1209_v10 }
  0x29   :  { %v610_v17 = vld.sshfl [vmem:[#allocation1] sm:$0xff pattern:$0x73625140]  ;;  %v1156_v20 = vor.u32 %v1425_v14, %v1153_v15  ;;  %v1424_v22 = vld [vmem:[%s2285_s1 + $0x84] sm:$0xf0]  ;;  %vm67_vm0 = vcmask 31744  }
  0x2a   :  { %v1143_v21 = vld [vmem:[%s2285_s1 + $0x80] sm:$0xf]  ;;  %v1423_v23 = vld [vmem:[%s2285_s1 + $0x84] sm:$0xf]  ;;  %v1327_v25 = vld [vmem:[%s2285_s1 + $0x1f0] sm:$0xf] }
  0x2b   :  { %v1470_v26 = vld [vmem:[%s2285_s1 + $0x1f4] sm:$0xf0]  ;;  %v1319_v33 = vld [vmem:[%s2285_s1 + $0x1e0] sm:$0xf]  ;;  %v1463_v47 = vld [vmem:[%s2285_s1 + $0x1c4] sm:$0xf] }
  0x2c   :  { %v1305_v48 = vld [vmem:[%s2285_s1 + $0x1c8] sm:$0xf0]  ;;  %v698_v59 = vld [vmem:[%s2288_s4 + $0x170] sm:$0xff]  ;;  %v1459_v0 = vld [vmem:[%s2285_s1 + $0x1a4] sm:$0xf]  ;;  %s1055_s29 = sshll.u32 %s2289_s5, 4  ;;  %s1056_s29 = int_to_ptr.hbm [resolvable:$true] %s1055_s29 }
  0x2d   :  { %504 = vmatpush.bf16.xpose.msra.mxu2 %v1184_v27  ;;  %v1469_v27 = vld [vmem:[%s2285_s1 + $0x1f4] sm:$0xf]  ;;  %v1289_v2 = vld [vmem:[%s2285_s1 + $0x1a8] sm:$0xf0]  ;;  %v1279_v9 = vld [vmem:[%s2285_s1 + $0x190] sm:$0xf] }
  0x2e   :  { %478 = vmatpush.bf16.xpose.msra.mxu0 %v1104_v28  ;;  %v1185_v28 = vld [vmem:[%s2285_s1 + $0xd8] sm:$0xf0]  ;;  %v714_v60 = vld [vmem:[%s2288_s4 + $0x1f0] sm:$0xff]  ;;  %v1458_v10 = vld [vmem:[%s2285_s1 + $0x194] sm:$0xf0]  ;;  %s1559_s30 = smov 512  }
  0x2f   :  { %492 = vmatpush.bf16.xpose.msra.mxu1 %v1108_v29  ;;  %v1188_v29 = vor.u32 %v1433_v24, %v1185_v28  ;;  %v1145_v24 = vld [vmem:[%s2285_s1 + $0x88] sm:$0xf0]  ;;  %v1329_v28 = vld [vmem:[%s2285_s1 + $0x1f8] sm:$0xf0]  ;;  %v1280_v15 = vor.u32 %v1458_v10, %v1279_v9  ;;  %v670_v9 = vld [vmem:[%s2288_s4 + $0x90] sm:$0xff]  ;;  %s1560_s6 = smov 32  }
  0x30   :  { %v1332_v32 = vor.u32 %v1469_v27, %v1329_v28  ;;  %v711_v14 = vld [vmem:[%s2288_s4 + $0x1d8] sm:$0xff]  ;;  %v692_v28 = vld [vmem:[%s2288_s4 + $0x140] sm:$0xff]  ;;  %v686_v10 = vld [vmem:[%s2288_s4 + $0x110] sm:$0xff] }
  0x31   :  { %518 = vmatpush.bf16.xpose.msra.mxu3 %v1188_v29  ;;  %v1144_v29 = vor.u32 %v1424_v22, %v1143_v21  ;;  %v1455_v21 = vld [vmem:[%s2285_s1 + $0x184] sm:$0xf]  ;;  %v1273_v22 = vld [vmem:[%s2285_s1 + $0x188] sm:$0xf0]  ;;  %v667_v27 = vld [vmem:[%s2288_s4 + $0x78] sm:$0xff] }
  0x36   :  { %479 = vmatpush.bf16.xpose.msra.mxu0 %v1096_v34  ;;  %v1445_v34 = vld [vmem:[%s2285_s1 + $0x134] sm:$0xf] }
  0x37   :  { %493 = vmatpush.bf16.xpose.msra.mxu1 %v1100_v35  ;;  %v1233_v35 = vld [vmem:[%s2285_s1 + $0x138] sm:$0xf0] }
  0x38   :  { %v1236_v37 = vor.u32 %v1445_v34, %v1233_v35  ;;  %v1468_v34 = vld [vmem:[%s2285_s1 + $0x1e4] sm:$0xf0]  ;;  %v1467_v35 = vld [vmem:[%s2285_s1 + $0x1e4] sm:$0xf] }
  0x3e   :  { %480 = vmatpush.bf16.xpose.msra.mxu0 %v1088_v40  ;;  %v1431_v40 = vld [vmem:[%s2285_s1 + $0xc4] sm:$0xf] }
  0x3f   :  { %494 = vmatpush.bf16.xpose.msra.mxu1 %v1092_v41  ;;  %v1176_v41 = vor.u32 %v1432_v39, %v1175_v38  ;;  %v1180_v45 = vor.u32 %v1431_v40, %v1177_v42  ;;  %v1311_v39 = vld [vmem:[%s2285_s1 + $0x1d0] sm:$0xf]  ;;  %v1466_v40 = vld [vmem:[%s2285_s1 + $0x1d4] sm:$0xf0]  ;;  %v1313_v42 = vld [vmem:[%s2285_s1 + $0x1d8] sm:$0xf0] }
  0x41   :  { %505 = vmatpush.bf16.xpose.msra.mxu2 %v1176_v41  ;;  %519 = vmatpush.bf16.xpose.msra.mxu3 %v1180_v45  ;;  %v1465_v41 = vld [vmem:[%s2285_s1 + $0x1d4] sm:$0xf]  ;;  %v1303_v45 = vld [vmem:[%s2285_s1 + $0x1c0] sm:$0xf] }
  0x42   :  { %v1316_v44 = vor.u32 %v1465_v41, %v1313_v42  ;;  %v680_v41 = vld [vmem:[%s2288_s4 + $0xe0] sm:$0xff] }
  0x46   :  { %481 = vmatpush.bf16.xpose.msra.mxu0 %v1080_v50  ;;  %v1430_v50 = vld [vmem:[%s2285_s1 + $0xb4] sm:$0xf0] }
  0x47   :  { %495 = vmatpush.bf16.xpose.msra.mxu1 %v1084_v51  ;;  %v1429_v51 = vld [vmem:[%s2285_s1 + $0xb4] sm:$0xf]  ;;  %v1168_v55 = vor.u32 %v1430_v50, %v1167_v49  ;;  %v1308_v50 = vor.u32 %v1463_v47, %v1305_v48  ;;  %v661_v47 = vld [vmem:[%s2288_s4 + $0x48] sm:$0xff] }
  0x48   :  { %v677_v48 = vld [vmem:[%s2288_s4 + $0xc8] sm:$0xff] }
  0x49   :  { %506 = vmatpush.bf16.xpose.msra.mxu2 %v1168_v55  ;;  %v699_v55 = vld [vmem:[%s2288_s4 + $0x178] sm:$0xff] }
  0x4d   :  { %482 = vmatmul.bf16.vlgmr.msra.gmra.mxu0 %v1726_v61 }
  0x4e   :  { %530 = vmatpush.bf16.xpose.msrb.mxu0 %v1264_v52  ;;  %496 = vmatmul.bf16.vlgmr.msra.gmra.mxu1 %v1737_v1  ;;  %v1169_v52 = vld [vmem:[%s2285_s1 + $0xb8] sm:$0xf0] }
  0x4f   :  { %544 = vmatpush.bf16.xpose.msrb.mxu1 %v1268_v53  ;;  %v1224_v53 = vor.u32 %v1444_v46, %v1223_v43  ;;  %v1172_v56 = vor.u32 %v1429_v51, %v1169_v52  ;;  %v1312_v43 = vor.u32 %v1466_v40, %v1311_v39  ;;  %v1464_v46 = vld [vmem:[%s2285_s1 + $0x1c4] sm:$0xf0]  ;;  %v1295_v51 = vld [vmem:[%s2285_s1 + $0x1b0] sm:$0xf]  ;;  %v1462_v52 = vld [vmem:[%s2285_s1 + $0x1b4] sm:$0xf0] }
  0x50   :  { %v1304_v49 = vor.u32 %v1464_v46, %v1303_v45  ;;  %v1296_v57 = vor.u32 %v1462_v52, %v1295_v51  ;;  %v664_v40 = vld [vmem:[%s2288_s4 + $0x60] sm:$0xff]  ;;  %v662_v45 = vld [vmem:[%s2288_s4 + $0x50] sm:$0xff]  ;;  %v659_v51 = vld [vmem:[%s2288_s4 + $0x38] sm:$0xff] }
  0x51   :  { %520 = vmatpush.bf16.xpose.msra.mxu3 %v1172_v56  ;;  %507 = vmatpush.bf16.xpose.msra.mxu2 %v1160_v4  ;;  %v715_v56 = vld [vmem:[%s2288_s4 + $0x1f8] sm:$0xff]  ;;  %v713_v4 = vld [vmem:[%s2288_s4 + $0x1e8] sm:$0xff]  ;;  %v678_v46 = vld [vmem:[%s2288_s4 + $0xd0] sm:$0xff] }
  0x52   :  { %v675_v52 = vld [vmem:[%s2288_s4 + $0xb8] sm:$0xff] }
  0x56   :  { %531 = vmatpush.bf16.xpose.msrb.mxu0 %v1256_v5  ;;  %v1161_v5 = vld [vmem:[%s2285_s1 + $0xa8] sm:$0xf0] }
  0x57   :  { %545 = vmatpush.bf16.xpose.msrb.mxu1 %v1260_v7  ;;  %v1164_v6 = vor.u32 %v1427_v3, %v1161_v5  ;;  %v1207_v7 = vld [vmem:[%s2285_s1 + $0x100] sm:$0xf]  ;;  %v697_v3 = vld [vmem:[%s2288_s4 + $0x168] sm:$0xff] }
  0x58   :  { %v1208_v13 = vor.u32 %v1440_v8, %v1207_v7  ;;  %v696_v7 = vld [vmem:[%s2288_s4 + $0x160] sm:$0xff] }
  0x59   :  { %521 = vmatpush.bf16.xpose.msra.mxu3 %v1164_v6  ;;  %v1292_v6 = vor.u32 %v1459_v0, %v1289_v2  ;;  %v712_v8 = vld [vmem:[%s2288_s4 + $0x1e0] sm:$0xff] }
  0x5a   :  { %v688_v0 = vld [vmem:[%s2288_s4 + $0x120] sm:$0xff] }
  0x5b   :  { %v704_v2 = vld [vmem:[%s2288_s4 + $0x1a0] sm:$0xff] }
  0x5e   :  { %532 = vmatpush.bf16.xpose.msrb.mxu0 %v1248_v18  ;;  %v1152_v18 = vor.u32 %v1426_v12, %v1151_v11  ;;  %v1457_v11 = vld [vmem:[%s2285_s1 + $0x194] sm:$0xf]  ;;  %v1281_v12 = vld [vmem:[%s2285_s1 + $0x198] sm:$0xf0] }
  0x5f   :  { %546 = vmatpush.bf16.xpose.msrb.mxu1 %v1252_v19  ;;  %v611_v19 = vld.sshfl [vmem:[#allocation1 + $0x8] sm:$0xff pattern:$0x73625140] }
  0x60   :  { %508 = vmatpush.bf16.xpose.msra.mxu2 %v1152_v18  ;;  %v710_v18 = vld [vmem:[%s2288_s4 + $0x1d0] sm:$0xff] }
  0x61   :  { %522 = vmatpush.bf16.xpose.msra.mxu3 %v1156_v20  ;;  %v1456_v20 = vld [vmem:[%s2285_s1 + $0x184] sm:$0xf0] }
  0x66   :  { %533 = vmatpush.bf16.xpose.msrb.mxu0 %v1240_v30  ;;  %v1148_v30 = vor.u32 %v1423_v23, %v1145_v24  ;;  %v693_v23 = vld [vmem:[%s2288_s4 + $0x148] sm:$0xff] }
  0x67   :  { %547 = vmatpush.bf16.xpose.msrb.mxu1 %v1244_v31  ;;  %v1328_v31 = vor.u32 %v1470_v26, %v1327_v25  ;;  %v709_v24 = vld [vmem:[%s2288_s4 + $0x1c8] sm:$0xff]  ;;  %v1276_v26 = vor.u32 %v1455_v21, %v1273_v22 }
  0x68   :  { %509 = vmatpush.bf16.xpose.msra.mxu2 %v1144_v29  ;;  %v708_v29 = vld [vmem:[%s2288_s4 + $0x1c0] sm:$0xff] }
  0x69   :  { %523 = vmatpush.bf16.xpose.msra.mxu3 %v1148_v30  ;;  %v683_v30 = vld [vmem:[%s2288_s4 + $0xf8] sm:$0xff] }
  0x6e   :  { %534 = vmatpush.bf16.xpose.msrb.mxu0 %v1232_v36  ;;  %v1321_v36 = vld [vmem:[%s2285_s1 + $0x1e8] sm:$0xf0] }
  0x6f   :  { %548 = vmatpush.bf16.xpose.msrb.mxu1 %v1236_v37  ;;  %v1320_v37 = vor.u32 %v1468_v34, %v1319_v33  ;;  %v1324_v38 = vor.u32 %v1467_v35, %v1321_v36  ;;  %510 = vmatmul.bf16.vlgmr.msra.gmra.mxu2 %v1726_v61  ;;  %v707_v33 = vld [vmem:[%s2288_s4 + $0x1b8] sm:$0xff]  ;;  %v682_v34 = vld [vmem:[%s2288_s4 + $0xf0] sm:$0xff]  ;;  %v665_v35 = vld [vmem:[%s2288_s4 + $0x68] sm:$0xff] }
  0x70   :  { %558 = vmatpush.bf16.xpose.msrb.mxu2 %v1328_v31  ;;  %524 = vmatmul.bf16.vlgmr.msra.gmra.mxu3 %v1737_v1  ;;  %v666_v31 = vld [vmem:[%s2288_s4 + $0x70] sm:$0xff]  ;;  %v681_v36 = vld [vmem:[%s2288_s4 + $0xe8] sm:$0xff] }
  0x71   :  { %572 = vmatpush.bf16.xpose.msrb.mxu3 %v1332_v32  ;;  %v691_v32 = vld [vmem:[%s2288_s4 + $0x138] sm:$0xff] }
  0x76   :  { %535 = vmatpush.bf16.xpose.msrb.mxu0 %v1224_v53  ;;  %v1461_v53 = vld [vmem:[%s2285_s1 + $0x1b4] sm:$0xf] }
  0x77   :  { %549 = vmatpush.bf16.xpose.msrb.mxu1 %v1228_v54  ;;  %v1297_v54 = vld [vmem:[%s2285_s1 + $0x1b8] sm:$0xf0] }
  0x78   :  { %559 = vmatpush.bf16.xpose.msrb.mxu2 %v1320_v37  ;;  %v1300_v58 = vor.u32 %v1461_v53, %v1297_v54  ;;  %v658_v53 = vld [vmem:[%s2288_s4 + $0x30] sm:$0xff] }
  0x79   :  { %573 = vmatpush.bf16.xpose.msrb.mxu3 %v1324_v38  ;;  %v674_v54 = vld [vmem:[%s2288_s4 + $0xb0] sm:$0xff] }
  0x7e   :  { %536 = vmatpush.bf16.xpose.msrb.mxu0 %v1216_v62  ;;  %v1287_v62 = vld [vmem:[%s2285_s1 + $0x1a0] sm:$0xf] }
  0x7f   :  { %550 = vmatpush.bf16.xpose.msrb.mxu1 %v1220_v63  ;;  %v1460_v63 = vld [vmem:[%s2285_s1 + $0x1a4] sm:$0xf0] }
  0x80   :  { %560 = vmatpush.bf16.xpose.msrb.mxu2 %v1312_v43  ;;  %v1288_v5 = vor.u32 %v1460_v63, %v1287_v62  ;;  %v656_v62 = vld [vmem:[%s2288_s4 + $0x20] sm:$0xff] }
  0x81   :  { %574 = vmatpush.bf16.xpose.msrb.mxu3 %v1316_v44  ;;  %v672_v63 = vld [vmem:[%s2288_s4 + $0xa0] sm:$0xff] }
  0x86   :  { %537 = vmatpush.bf16.xpose.msrb.mxu0 %v1208_v13  ;;  %v695_v13 = vld [vmem:[%s2288_s4 + $0x158] sm:$0xff] }
  0x87   :  { %551 = vmatpush.bf16.xpose.msrb.mxu1 %v1212_v16  ;;  %v1284_v16 = vor.u32 %v1457_v11, %v1281_v12  ;;  %v702_v11 = vld [vmem:[%s2288_s4 + $0x190] sm:$0xff]  ;;  %v653_v12 = vld [vmem:[%s2288_s4 + $0x8] sm:$0xff] }
  0x88   :  { %561 = vmatpush.bf16.xpose.msrb.mxu2 %v1304_v49  ;;  %v660_v49 = vld [vmem:[%s2288_s4 + $0x40] sm:$0xff] }
  0x89   :  { %575 = vmatpush.bf16.xpose.msrb.mxu3 %v1308_v50  ;;  %v676_v50 = vld [vmem:[%s2288_s4 + $0xc0] sm:$0xff] }
  0x8d   :  { %538 = vmatmul.bf16.vlgmr.msrb.gmra.mxu0 %v1726_v61 }
  0x8e   :  { %621 = vmatpush.bf16.xpose.msra.mxu0 %v610_v17  ;;  %552 = vmatmul.bf16.vlgmr.msrb.gmra.mxu1 %v1737_v1  ;;  %v694_v17 = vld [vmem:[%s2288_s4 + $0x150] sm:$0xff] }
  0x8f   :  { %635 = vmatpush.bf16.xpose.msra.mxu1 %v611_v19  ;;  %v1271_v19 = vld [vmem:[%s2285_s1 + $0x180] sm:$0xf] }
  0x90   :  { %562 = vmatpush.bf16.xpose.msrb.mxu2 %v1296_v57  ;;  %v1272_v25 = vor.u32 %v1456_v20, %v1271_v19  ;;  %v689_v57 = vld [vmem:[%s2288_s4 + $0x128] sm:$0xff]  ;;  %v700_v19 = vld [vmem:[%s2288_s4 + $0x180] sm:$0xff] }
  0x91   :  { %576 = vmatpush.bf16.xpose.msrb.mxu3 %v1300_v58  ;;  %v657_v58 = vld [vmem:[%s2288_s4 + $0x28] sm:$0xff] }
  0x96   :  { %1369 = vmatpush.xpose.msk.msrb.mxu0 %vm67_vm0, %v699_v55  ;;  %v690_v55 = vld [vmem:[%s2288_s4 + $0x130] sm:$0xff] }
  0x97   :  { %1387 = vmatpush.xpose.msk.msrb.mxu1 %vm67_vm0, %v715_v56  ;;  %v706_v56 = vld [vmem:[%s2288_s4 + $0x1b0] sm:$0xff] }
  0x98   :  { %563 = vmatpush.bf16.xpose.msrb.mxu2 %v1288_v5  ;;  %v655_v5 = vld [vmem:[%s2288_s4 + $0x18] sm:$0xff] }
  0x99   :  { %577 = vmatpush.bf16.xpose.msrb.mxu3 %v1292_v6  ;;  %v703_v6 = vld [vmem:[%s2288_s4 + $0x198] sm:$0xff] }
  0x9a   :  { %1370 = vmatpush.xpose.msk.msrb.mxu0 %vm67_vm0, %v698_v59  ;;  %v705_v59 = vld [vmem:[%s2288_s4 + $0x1a8] sm:$0xff] }
  0x9b   :  { %1388 = vmatpush.xpose.msk.msrb.mxu1 %vm67_vm0, %v714_v60  ;;  %v673_v60 = vld [vmem:[%s2288_s4 + $0xa8] sm:$0xff] }
  0x9d   :  { %622 = vmatmul.bf16.vlgmr.msra.gmra.mxu0 %v1726_v61 }
  0x9e   :  { %636 = vmatmul.bf16.vlgmr.msra.gmra.mxu1 %v1737_v1  ;;  %1371 = vmatpush.xpose.msk.msrb.mxu0 %vm67_vm0, %v697_v3  ;;  %v687_v3 = vld [vmem:[%s2288_s4 + $0x118] sm:$0xff] }
  0x9f   :  { %1389 = vmatpush.xpose.msk.msrb.mxu1 %vm67_vm0, %v713_v4  ;;  %v1557_v4 = vmov 0.0  }
  0xa0   :  { %564 = vmatpush.bf16.xpose.msrb.mxu2 %v1280_v15  ;;  %68 = vst.msk [vmem:[#allocation3] sm:$0xff] %vm67_vm0, %v1557_v4  ;;  %v701_v15 = vld [vmem:[%s2288_s4 + $0x188] sm:$0xff] }
  0xa1   :  { %578 = vmatpush.bf16.xpose.msrb.mxu3 %v1284_v16  ;;  %69 = vst.msk [vmem:[#allocation3 + $0x8] sm:$0xff] %vm67_vm0, %v1557_v4  ;;  %v652_v16 = vld [vmem:[%s2288_s4] sm:$0xff] }
  0xa2   :  { %1372 = vmatpush.xpose.msk.msrb.mxu0 %vm67_vm0, %v696_v7  ;;  %v671_v7 = vld [vmem:[%s2288_s4 + $0x98] sm:$0xff] }
  0xa3   :  { %1390 = vmatpush.xpose.msk.msrb.mxu1 %vm67_vm0, %v712_v8  ;;  %v654_v8 = vld [vmem:[%s2288_s4 + $0x10] sm:$0xff] }
  0xa6   :  { %1373 = vmatpush.xpose.msk.msrb.mxu0 %vm67_vm0, %v695_v13  ;;  %v669_v13 = vld [vmem:[%s2288_s4 + $0x88] sm:$0xff] }
  0xa7   :  { %1391 = vmatpush.xpose.msk.msrb.mxu1 %vm67_vm0, %v711_v14  ;;  %v685_v14 = vld [vmem:[%s2288_s4 + $0x108] sm:$0xff] }
  0xa8   :  { %565 = vmatpush.bf16.xpose.msrb.mxu2 %v1272_v25 }
  0xa9   :  { %579 = vmatpush.bf16.xpose.msrb.mxu3 %v1276_v26 }
  0xaa   :  { %1374 = vmatpush.xpose.msk.msrb.mxu0 %vm67_vm0, %v694_v17  ;;  %v668_v17 = vld [vmem:[%s2288_s4 + $0x80] sm:$0xff] }
  0xab   :  { %1392 = vmatpush.xpose.msk.msrb.mxu1 %vm67_vm0, %v710_v18  ;;  %v684_v18 = vld [vmem:[%s2288_s4 + $0x100] sm:$0xff] }
  0xae   :  { %1375 = vmatpush.xpose.msk.msrb.mxu0 %vm67_vm0, %v693_v23 }
  0xaf   :  { %1393 = vmatpush.xpose.msk.msrb.mxu1 %vm67_vm0, %v709_v24  ;;  %566 = vmatmul.bf16.vlgmr.msrb.gmra.mxu2 %v1726_v61  ;;  %v663_v61 = vld [vmem:[%s2288_s4 + $0x58] sm:$0xff] }
  0xb0   :  { %1333 = vmatpush.xpose.msk.msra.mxu2 %vm67_vm0, %v667_v27  ;;  %580 = vmatmul.bf16.vlgmr.msrb.gmra.mxu3 %v1737_v1  ;;  %v679_v1 = vld [vmem:[%s2288_s4 + $0xd8] sm:$0xff]  ;;  %v605_v27 = vld [vmem:[#allocation3] sm:$0xff]  ;;  %s1558_s4 = smov [#allocation9]  }
  0xb1   :  { %1351 = vmatpush.xpose.msk.msra.mxu3 %vm67_vm0, %v683_v30  ;;  %s1053_s27 = sshll.u32 %s1558_s4, 4  ;;  %s1054_s27 = int_to_ptr.vmem [resolvable:$true] %s1053_s27 }
  0xb2   :  { %1376 = vmatpush.xpose.msk.msrb.mxu0 %vm67_vm0, %v692_v28 }
  0xb3   :  { %1394 = vmatpush.xpose.msk.msrb.mxu1 %vm67_vm0, %v708_v29 }
  0xb4   :  { %1334 = vmatpush.xpose.msk.msra.mxu2 %vm67_vm0, %v666_v31 }
  0xb5   :  { %1352 = vmatpush.xpose.msk.msra.mxu3 %vm67_vm0, %v682_v34 }
  0xb6   :  { %1377 = vmatpush.xpose.msk.msrb.mxu0 %vm67_vm0, %v691_v32  ;;  %v606_v32 = vld [vmem:[#allocation3 + $0x8] sm:$0xff] }
  0xb7   :  { %1395 = vmatpush.xpose.msk.msrb.mxu1 %vm67_vm0, %v707_v33 }
  0xb8   :  { %1335 = vmatpush.xpose.msk.msra.mxu2 %vm67_vm0, %v665_v35 }
  0xb9   :  { %1353 = vmatpush.xpose.msk.msra.mxu3 %vm67_vm0, %v681_v36 }
  0xba   :  { %1378 = vmatpush.xpose.msk.msrb.mxu0 %vm67_vm0, %v690_v55 }
  0xbb   :  { %1396 = vmatpush.xpose.msk.msrb.mxu1 %vm67_vm0, %v706_v56 }
  0xbc   :  { %1336 = vmatpush.xpose.msk.msra.mxu2 %vm67_vm0, %v664_v40 }
  0xbd   :  { %1354 = vmatpush.xpose.msk.msra.mxu3 %vm67_vm0, %v680_v41 }
  0xbe   :  { %1379 = vmatpush.xpose.msk.msrb.mxu0 %vm67_vm0, %v689_v57 }
  0xbf   :  { %1397 = vmatpush.xpose.msk.msrb.mxu1 %vm67_vm0, %v705_v59 }
  0xc0   :  { %1337 = vmatpush.xpose.msk.msra.mxu2 %vm67_vm0, %v663_v61 }
  0xc1   :  { %1355 = vmatpush.xpose.msk.msra.mxu3 %vm67_vm0, %v679_v1 }
  0xc2   :  { %1380 = vmatpush.xpose.msk.msrb.mxu0 %vm67_vm0, %v688_v0 }
  0xc3   :  { %1398 = vmatpush.xpose.msk.msrb.mxu1 %vm67_vm0, %v704_v2 }
  0xc4   :  { %1338 = vmatpush.xpose.msk.msra.mxu2 %vm67_vm0, %v662_v45 }
  0xc5   :  { %1356 = vmatpush.xpose.msk.msra.mxu3 %vm67_vm0, %v678_v46 }
  0xc6   :  { %1381 = vmatpush.xpose.msk.msrb.mxu0 %vm67_vm0, %v687_v3 }
  0xc7   :  { %1399 = vmatpush.xpose.msk.msrb.mxu1 %vm67_vm0, %v703_v6 }
  0xc8   :  { %1339 = vmatpush.xpose.msk.msra.mxu2 %vm67_vm0, %v661_v47 }
  0xc9   :  { %1357 = vmatpush.xpose.msk.msra.mxu3 %vm67_vm0, %v677_v48 }
  0xca   :  { %v483_v37 = vpop.f32.mrf.mxu0  ;;  %1382 = vmatpush.xpose.msk.msrb.mxu0 %vm67_vm0, %v686_v10 }
  0xcb   :  { %v497_v38 = vpop.f32.mrf.mxu1  ;;  %1400 = vmatpush.xpose.msk.msrb.mxu1 %vm67_vm0, %v702_v11 }
  0xcc   :  { %v2103_v39 = vadd.f32 %v497_v38, %v483_v37  ;;  %1340 = vmatpush.xpose.msk.msra.mxu2 %vm67_vm0, %v660_v49 }
  0xcd   :  { %1358 = vmatpush.xpose.msk.msra.mxu3 %vm67_vm0, %v676_v50 }
  0xce   :  { %1383 = vmatpush.xpose.msk.msrb.mxu0 %vm67_vm0, %v685_v14 }
  0xcf   :  { %1401 = vmatpush.xpose.msk.msrb.mxu1 %vm67_vm0, %v701_v15 }
  0xd0   :  { %1341 = vmatpush.xpose.msk.msra.mxu2 %vm67_vm0, %v659_v51 }
  0xd1   :  { %1359 = vmatpush.xpose.msk.msra.mxu3 %vm67_vm0, %v675_v52 }
  0xd2   :  { %v485_v42 = vpop.f32.mrf.mxu0  ;;  %1384 = vmatpush.xpose.msk.msrb.mxu0 %vm67_vm0, %v684_v18 }
  0xd3   :  { %v499_v43 = vpop.f32.mrf.mxu1  ;;  %1402 = vmatpush.xpose.msk.msrb.mxu1 %vm67_vm0, %v700_v19 }
  0xd4   :  { %v2121_v44 = vadd.f32 %v499_v43, %v485_v42  ;;  %1342 = vmatpush.xpose.msk.msra.mxu2 %vm67_vm0, %v658_v53  ;;  %v1015_v43 = vld [vmem:[#allocation4] sm:$0xf] }
  0xd5   :  { %1360 = vmatpush.xpose.msk.msra.mxu3 %vm67_vm0, %v674_v54  ;;  %v1019_v46 = vperm.slane %v1015_v43, 2  ;;  %v1020_v47 = vperm.slane %v1015_v43, 3  ;;  %v1017_v55 = vperm.slane %v1015_v43, 0  ;;  %v1018_v56 = vperm.slane %v1015_v43, 1 }
  0xd8   :  { %1343 = vmatpush.xpose.msk.msra.mxu2 %vm67_vm0, %v657_v58 }
  0xd9   :  { %1361 = vmatpush.xpose.msk.msra.mxu3 %vm67_vm0, %v673_v60  ;;  %v1025_v60 = vadd.f32 %v1017_v55, %v2103_v39  ;;  %v1029_v39 = vadd.f32 %v1017_v55, %v2121_v44 }
  0xdc   :  { %1344 = vmatpush.xpose.msk.msra.mxu2 %vm67_vm0, %v656_v62 }
  0xdd   :  { %1362 = vmatpush.xpose.msk.msra.mxu3 %vm67_vm0, %v672_v63 }
  0xe0   :  { %1345 = vmatpush.xpose.msk.msra.mxu2 %vm67_vm0, %v655_v5 }
  0xe1   :  { %1363 = vmatpush.xpose.msk.msra.mxu3 %vm67_vm0, %v671_v7 }
  0xe4   :  { %1346 = vmatpush.xpose.msk.msra.mxu2 %vm67_vm0, %v654_v8 }
  0xe5   :  { %1364 = vmatpush.xpose.msk.msra.mxu3 %vm67_vm0, %v670_v9 }
  0xe8   :  { %1347 = vmatpush.xpose.msk.msra.mxu2 %vm67_vm0, %v653_v12 }
  0xe9   :  { %1365 = vmatpush.xpose.msk.msra.mxu3 %vm67_vm0, %v669_v13 }
  0xec   :  { %1348 = vmatpush.xpose.msk.msra.mxu2 %vm67_vm0, %v652_v16 }
  0xed   :  { %1366 = vmatpush.xpose.msk.msra.mxu3 %vm67_vm0, %v668_v17 }
  0xf2   :  { %v511_v38 = vpop.f32.mrf.mxu2 }
  0xf3   :  { %v525_v40 = vpop.f32.mrf.mxu3 }
  0xf4   :  { %v526_v52 = vadd.f32 %v525_v40, %v511_v38 }
  0xf6   :  { %v1026_v62 = vadd.f32 %v1018_v56, %v526_v52 }
  0xfa   :  { %v513_v41 = vpop.f32.mrf.mxu2 }
  0xfb   :  { %v527_v61 = vpop.f32.mrf.mxu3 }
  0xfc   :  { %v528_v6 = vadd.f32 %v527_v61, %v513_v41 }
  0xfe   :  { %v1030_v11 = vadd.f32 %v1018_v56, %v528_v6 }
 0x10a   :  { %v539_v20 = vpop.f32.mrf.mxu0 }
 0x10b   :  { %v553_v21 = vpop.f32.mrf.mxu1 }
 0x10c   :  { %v554_v22 = vadd.f32 %v553_v21, %v539_v20 }
 0x10e   :  { %v1027_v50 = vadd.f32 %v1019_v46, %v554_v22 }
 0x112   :  { %v541_v23 = vpop.f32.mrf.mxu0 }
 0x113   :  { %v555_v24 = vpop.f32.mrf.mxu1 }
 0x114   :  { %v556_v25 = vadd.f32 %v555_v24, %v541_v23 }
 0x116   :  { %v1031_v4 = vadd.f32 %v1019_v46, %v556_v25 }
 0x11a   :  { %v623_v26 = vpop.f32.mrf.mxu0 }
 0x11b   :  { %v637_v28 = vpop.f32.mrf.mxu1 }
 0x11c   :  { %v638_v29 = vadd.f32 %v637_v28, %v623_v26 }
 0x11e   :  { %v642_v30 = vadd.f32 %v638_v29, %v605_v27 }
 0x120   :  { %645 = vst.msk [vmem:[#allocation3] sm:$0xff] %vm67_vm0, %v642_v30 }
 0x122   :  { %v625_v31 = vpop.f32.mrf.mxu0 }
 0x123   :  { %v639_v33 = vpop.f32.mrf.mxu1 }
 0x124   :  { %v640_v34 = vadd.f32 %v639_v33, %v625_v31 }
 0x126   :  { %v643_v35 = vadd.f32 %v640_v34, %v606_v32 }
 0x127   :  { %v650_v36 = vld [vmem:[#allocation3] sm:$0xff] }
 0x128   :  { %646 = vst.msk [vmem:[#allocation3 + $0x8] sm:$0xff] %vm67_vm0, %v643_v35  ;;  %1349 = vmatmul.msk.f32.vlgmr.msra.gmra.mxu2 %vm67_vm0, %v650_v36  ;;  %1367 = vmatmul.msk.f32.vlgmr.msra.gmra.mxu3 %vm67_vm0, %v650_v36 }
 0x129   :  { %1385 = vmatmul.msk.f32.vlgmr.msrb.gmra.mxu0 %vm67_vm0, %v650_v36  ;;  %1403 = vmatmul.msk.f32.vlgmr.msrb.gmra.mxu1 %vm67_vm0, %v650_v36 }
 0x12f   :  { %v651_v37 = vld [vmem:[#allocation3 + $0x8] sm:$0xff] }
 0x130   :  { %1350 = vmatmul.msk.f32.gmra.mxu2 %vm67_vm0, %v651_v37  ;;  %1368 = vmatmul.msk.f32.gmra.mxu3 %vm67_vm0, %v651_v37 }
 0x131   :  { %1386 = vmatmul.msk.f32.gmra.mxu0 %vm67_vm0, %v651_v37  ;;  %1404 = vmatmul.msk.f32.gmra.mxu1 %vm67_vm0, %v651_v37 }
 0x132   :  { %v567_v1 = vpop.f32.mrf.mxu2 }
 0x133   :  { %v581_v42 = vpop.f32.mrf.mxu3 }
 0x134   :  { %v582_v45 = vadd.f32 %v581_v42, %v567_v1 }
 0x136   :  { %v1028_v51 = vadd.f32 %v1020_v47, %v582_v45 }
 0x13a   :  { %v569_v48 = vpop.f32.mrf.mxu2 }
 0x13b   :  { %v583_v49 = vpop.f32.mrf.mxu3 }
 0x13c   :  { %v584_v59 = vadd.f32 %v583_v49, %v569_v48 }
 0x13e   :  { %v1032_v5 = vadd.f32 %v1020_v47, %v584_v59 }
 0x1a6   :  { %v978_v53 = vpop.f32.mrf.mxu0  ;;  %v1001_v54 = vpop.f32.mrf.mxu1 }
 0x1a7   :  { %v1035_v57 = vadd.f32 %v1027_v50, %v978_v53  ;;  %v1036_v58 = vadd.f32 %v1028_v51, %v1001_v54 }
 0x1a9   :  { %1043 = vst [vmem:[#allocation9 + $0x10] sm:$0xff] %v1035_v57 }
 0x1aa   :  { %1044 = vst [vmem:[#allocation9 + $0x18] sm:$0xff] %v1036_v58 }
 0x1ab   :  { %v932_v63 = vpop.f32.mrf.mxu2  ;;  %v955_v0 = vpop.f32.mrf.mxu3 }
 0x1ac   :  { %v1033_v2 = vadd.f32 %v1025_v60, %v932_v63  ;;  %v1034_v3 = vadd.f32 %v1026_v62, %v955_v0 }
 0x1ae   :  { %1041 = vst [vmem:[#allocation9] sm:$0xff] %v1033_v2  ;;  %v981_v7 = vpop.f32.mrf.mxu0  ;;  %v1004_v8 = vpop.f32.mrf.mxu1 }
 0x1af   :  { %1042 = vst [vmem:[#allocation9 + $0x8] sm:$0xff] %v1034_v3  ;;  %v1039_v9 = vadd.f32 %v1031_v4, %v981_v7  ;;  %v1040_v10 = vadd.f32 %v1032_v5, %v1004_v8 }
 0x1b1   :  { %1047 = vst [vmem:[#allocation9 + $0x30] sm:$0xff] %v1039_v9 }
 0x1b2   :  { %1048 = vst [vmem:[#allocation9 + $0x38] sm:$0xff] %v1040_v10 }
 0x1b3   :  { %v935_v12 = vpop.f32.mrf.mxu2  ;;  %v958_v13 = vpop.f32.mrf.mxu3 }
 0x1b4   :  { %v1037_v14 = vadd.f32 %v1029_v39, %v935_v12  ;;  %v1038_v15 = vadd.f32 %v1030_v11, %v958_v13 }
 0x1b6   :  { %1045 = vst [vmem:[#allocation9 + $0x20] sm:$0xff] %v1037_v14 }
 0x1b7   :  { %1046 = vst [vmem:[#allocation9 + $0x28] sm:$0xff] %v1038_v15 }
 0x1b8   :  { %1061 = dma.vmem_to_hbm [thread:$0]  %s1054_s27, 1024, %s1056_s29, [#allocation6], %s1559_s30, %s1559_s30, %s1560_s6  }
 0x1b9   :  { %1553 = dma.done.wait [#allocation6], 1024  }
 0x1ba   :  { %1554 = vsyncadd [#allocation6], 4294966272 }
 0x1bb   :  { %1066 = vsyncpa [#allocation5], 1 }
 0x1bc   :  { %1067 = vsyncpa [#allocation8], 1 }
 0x1bd   :  { %1068 = vsyncpa [#allocation6], 1 }

</bundles_post_ra>
